<compile_context>
chip_gen: v5e
topology: v5e:2x2
jax: 0.10.0
libtpu: 0.0.40
codegen_flags: <defaults>
</compile_context>

<pallas_src>
import jax
import jax.numpy as jnp
from jax.experimental import pallas as pl
from jax.experimental.pallas import tpu as pltpu


def _round_up(a, m):
    return ((a + m - 1) // m) * m


def classifier_kernel(x_ref, w1_ref, b1_ref, w2_ref, b2_ref, w3_ref, b3_ref, o_ref):
    # Cast x f32 -> bf16 in-kernel (idle VPU); avoids a separate HBM pass in the wrapper.
    x = x_ref[...].astype(jnp.bfloat16)

    # Layer 1: Linear(insize -> h1) + ReLU   (bf16 GEMM, f32 accumulate + f32 epilogue)
    h1 = jnp.dot(x, w1_ref[...], preferred_element_type=jnp.float32)
    h1 = jnp.maximum(h1 + b1_ref[...], 0.0).astype(jnp.bfloat16)

    # Layer 2: Linear(h1 -> h2) + ReLU
    h2 = jnp.dot(h1, w2_ref[...], preferred_element_type=jnp.float32)
    h2 = jnp.maximum(h2 + b2_ref[...], 0.0)  # keep f32 for the layer-3 reduce

    # Layer 3: Linear(h2 -> 1) as VPU multiply + lane reduction (no padded MXU GEMM).
    # w3_ref is the (1, h2) f32 row vector; b3_ref is (1, 1) f32.
    out = jnp.sum(h2 * w3_ref[...], axis=-1, keepdims=True) + b3_ref[...]
    o_ref[...] = out.astype(o_ref.dtype)


def classifier_forward(x, params, *, tb=None):
    """x: (B, insize) f32.  params: (w1, b1, w2, b2, w3, b3) f32, weights stored (in, out)."""
    w1, b1, w2, b2, w3, b3 = params
    B, insize = x.shape
    h1 = w1.shape[1]
    h2 = w2.shape[1]

    # Batch tile: multiple of 8 (sublane), capped at 4096.  Partial last block is fine:
    # out-of-range rows compute garbage that is never written back.
    if tb is None:
        tb = max(8, min(4096, _round_up(B, 8)))
    tb = _round_up(tb, 8)
    n_tiles = pl.cdiv(B, tb)

    # One-time casts of the (tiny) weights; x stays f32 and is cast inside the kernel.
    w1_bf = w1.astype(jnp.bfloat16)
    w2_bf = w2.astype(jnp.bfloat16)
    w3_row = w3.T          # (1, h2), f32 — used on the VPU, not the MXU
    # b1 (1, h1), b2 (1, h2), b3 (1, 1): all f32.

    def resident(a):
        # Whole (small) array stays VMEM-resident across all grid steps.
        return pl.BlockSpec(a.shape, lambda i: (0, 0))

    flops = 2 * B * (insize * h1 + h1 * h2 + h2)
    bytes_accessed = (
        x.size * 4                       # x read (f32)
        + w1_bf.size * 2 + w2_bf.size * 2 + w3_row.size * 4
        + b1.size * 4 + b2.size * 4 + b3.size * 4
        + B * 1 * 4                      # narrow f32 output
    )

    out = pl.pallas_call(
        classifier_kernel,
        out_shape=jax.ShapeDtypeStruct((B, 1), jnp.float32),
        grid_spec=pltpu.PrefetchScalarGridSpec(
            num_scalar_prefetch=0,
            grid=(n_tiles,),
            in_specs=[
                pl.BlockSpec((tb, insize), lambda i: (i, 0)),   # x: batch-tiled, f32
                resident(w1_bf), resident(b1),
                resident(w2_bf), resident(b2),
                resident(w3_row), resident(b3),
            ],
            out_specs=pl.BlockSpec((tb, 1), lambda i: (i, 0)),  # narrow (B, 1) output
        ),
        compiler_params=pltpu.CompilerParams(
            # On v7x, pltpu.CORE_PARALLEL here forces batch tiles onto both TensorCores;
            # "parallel" is kept as the portable default for v5e/v6e.
            dimension_semantics=("parallel",),
        ),
        cost_estimate=pl.CostEstimate(
            flops=flops, transcendentals=0, bytes_accessed=bytes_accessed),
    )(x, w1_bf, b1, w2_bf, b2, w3_row, b3)

    return out


def init_params(key, insize, h1, h2):
    """PyTorch-style default Linear init: U(-1/sqrt(fan_in), 1/sqrt(fan_in)).
    Weights stored (in, out) = W^T relative to PyTorch's (out, in)."""
    ks = jax.random.split(key, 6)

    def lin(kw, kb, fan_in, fan_out):
        bound = 1.0 / jnp.sqrt(fan_in)
        w = jax.random.uniform(kw, (fan_in, fan_out), jnp.float32, -bound, bound)
        b = jax.random.uniform(kb, (1, fan_out), jnp.float32, -bound, bound)
        return w, b

    w1, b1 = lin(ks[0], ks[1], insize, h1)
    w2, b2 = lin(ks[2], ks[3], h1, h2)
    w3, b3 = lin(ks[4], ks[5], h2, 1)
    return (w1, b1, w2, b2, w3, b3)


if __name__ == "__main__":
    # Small shapes consistent with the module: insize=32, hiden_size[1]=64,
    # hiden_size[2]=32, batch=8.
    B, INSIZE, H1, H2 = 8, 32, 64, 32

    key = jax.random.PRNGKey(0)
    k_x, k_p = jax.random.split(key)
    x = jax.random.normal(k_x, (B, INSIZE), dtype=jnp.float32)
    params = init_params(k_p, INSIZE, H1, H2)

    out = classifier_forward(x, params)
    out = jax.block_until_ready(out)
    assert out.shape == (B, 1)

    # Reference 1: identical math to the kernel in plain JAX (tight check):
    # bf16 GEMMs w/ f32 accumulation for layers 1-2, f32 mul+reduce for layer 3.
    w1, b1, w2, b2, w3, b3 = params
    xb = x.astype(jnp.bfloat16)
    r = jnp.maximum(jnp.dot(xb, w1.astype(jnp.bfloat16),
                            preferred_element_type=jnp.float32) + b1, 0.0).astype(jnp.bfloat16)
    r = jnp.maximum(jnp.dot(r, w2.astype(jnp.bfloat16),
                            preferred_element_type=jnp.float32) + b2, 0.0)
    ref_kernel_math = jnp.sum(r * w3.T, axis=-1, keepdims=True) + b3
    assert jnp.allclose(out, ref_kernel_math, atol=2e-3, rtol=2e-3)

    # Reference 2: full-f32 semantics of the original PyTorch module (loose sanity check).
    ref_f32 = jnp.maximum(x @ w1 + b1, 0.0)
    ref_f32 = jnp.maximum(ref_f32 @ w2 + b2, 0.0)
    ref_f32 = ref_f32 @ w3 + b3
    assert jnp.allclose(out, ref_f32, atol=3e-2, rtol=3e-2)

    print("KERNEL_OK")
</pallas_src>

<mosaic_0001>
module attributes {stable_mosaic.version = 11 : i64} {
  func.func @classifier_kernel(%arg0: i32, %arg1: memref<8x32xf32, #tpu.memory_space<vmem>>, %arg2: memref<32x64xbf16, #tpu.memory_space<vmem>>, %arg3: memref<1x64xf32, #tpu.memory_space<vmem>>, %arg4: memref<64x32xbf16, #tpu.memory_space<vmem>>, %arg5: memref<1x32xf32, #tpu.memory_space<vmem>>, %arg6: memref<1x32xf32, #tpu.memory_space<vmem>>, %arg7: memref<1x1xf32, #tpu.memory_space<vmem>>, %arg8: memref<8x1xf32, #tpu.memory_space<vmem>>) attributes {dimension_semantics = [#tpu.dimension_semantics<parallel>], iteration_bounds = array<i64: 1>, scalar_prefetch = 0 : i64, scratch_operands = 0 : i64, tpu.core_type = #tpu.core_type<tc>, window_params = [{transform_indices = @transform_0, window_bounds = array<i64: 8, 32>}, {pipeline_mode = #tpu.pipeline_mode<synchronous>, transform_indices = @transform_1, window_bounds = array<i64: 32, 64>}, {pipeline_mode = #tpu.pipeline_mode<synchronous>, transform_indices = @transform_2, window_bounds = array<i64: 1, 64>}, {pipeline_mode = #tpu.pipeline_mode<synchronous>, transform_indices = @transform_3, window_bounds = array<i64: 64, 32>}, {pipeline_mode = #tpu.pipeline_mode<synchronous>, transform_indices = @transform_4, window_bounds = array<i64: 1, 32>}, {pipeline_mode = #tpu.pipeline_mode<synchronous>, transform_indices = @transform_5, window_bounds = array<i64: 1, 32>}, {pipeline_mode = #tpu.pipeline_mode<synchronous>, transform_indices = @transform_6, window_bounds = array<i64: 1, 1>}, {transform_indices = @transform_7, window_bounds = array<i64: 8, 1>}]} {
    %c0 = arith.constant 0 : index
    %c0_0 = arith.constant 0 : index
    %0 = vector.load %arg1[%c0, %c0_0] : memref<8x32xf32, #tpu.memory_space<vmem>>, vector<8x32xf32>
    %1 = arith.truncf %0 : vector<8x32xf32> to vector<8x32xbf16>
    %c0_1 = arith.constant 0 : index
    %c0_2 = arith.constant 0 : index
    %2 = vector.load %arg2[%c0_1, %c0_2] : memref<32x64xbf16, #tpu.memory_space<vmem>>, vector<32x64xbf16>
    %cst = arith.constant dense<0.000000e+00> : vector<8x64xf32>
    %3 = tpu.matmul %1, %2, %cst {dimension_numbers = #tpu.dot_dimension_numbers<[1], [0], [0], [1], [0, 0, 1, 1], [], []>} : vector<8x32xbf16>, vector<32x64xbf16>, vector<8x64xf32> -> vector<8x64xf32>
    %c0_3 = arith.constant 0 : index
    %c0_4 = arith.constant 0 : index
    %4 = vector.load %arg3[%c0_3, %c0_4] : memref<1x64xf32, #tpu.memory_space<vmem>>, vector<1x64xf32>
    %5 = vector.broadcast %4 : vector<1x64xf32> to vector<8x64xf32>
    %6 = arith.addf %3, %5 : vector<8x64xf32>
    %cst_5 = arith.constant 0.000000e+00 : f32
    %7 = vector.broadcast %cst_5 : f32 to vector<8x64xf32>
    %8 = arith.maximumf %6, %7 : vector<8x64xf32>
    %9 = arith.truncf %8 : vector<8x64xf32> to vector<8x64xbf16>
    %c0_6 = arith.constant 0 : index
    %c0_7 = arith.constant 0 : index
    %10 = vector.load %arg4[%c0_6, %c0_7] : memref<64x32xbf16, #tpu.memory_space<vmem>>, vector<64x32xbf16>
    %cst_8 = arith.constant dense<0.000000e+00> : vector<8x32xf32>
    %11 = tpu.matmul %9, %10, %cst_8 {dimension_numbers = #tpu.dot_dimension_numbers<[1], [0], [0], [1], [0, 0, 1, 1], [], []>} : vector<8x64xbf16>, vector<64x32xbf16>, vector<8x32xf32> -> vector<8x32xf32>
    %c0_9 = arith.constant 0 : index
    %c0_10 = arith.constant 0 : index
    %12 = vector.load %arg5[%c0_9, %c0_10] : memref<1x32xf32, #tpu.memory_space<vmem>>, vector<1x32xf32>
    %13 = vector.broadcast %12 : vector<1x32xf32> to vector<8x32xf32>
    %14 = arith.addf %11, %13 : vector<8x32xf32>
    %cst_11 = arith.constant 0.000000e+00 : f32
    %15 = vector.broadcast %cst_11 : f32 to vector<8x32xf32>
    %16 = arith.maximumf %14, %15 : vector<8x32xf32>
    %c0_12 = arith.constant 0 : index
    %c0_13 = arith.constant 0 : index
    %17 = vector.load %arg6[%c0_12, %c0_13] : memref<1x32xf32, #tpu.memory_space<vmem>>, vector<1x32xf32>
    %18 = vector.broadcast %17 : vector<1x32xf32> to vector<8x32xf32>
    %19 = arith.mulf %16, %18 : vector<8x32xf32>
    %cst_14 = arith.constant dense<0.000000e+00> : vector<8xf32>
    %20 = vector.multi_reduction <add>, %19, %cst_14 [1] : vector<8x32xf32> to vector<8xf32>
    %21 = vector.shape_cast %20 : vector<8xf32> to vector<8x1xf32>
    %c0_15 = arith.constant 0 : index
    %c0_16 = arith.constant 0 : index
    %22 = vector.load %arg7[%c0_15, %c0_16] : memref<1x1xf32, #tpu.memory_space<vmem>>, vector<1x1xf32>
    %23 = vector.broadcast %22 : vector<1x1xf32> to vector<8x1xf32>
    %24 = arith.addf %21, %23 : vector<8x1xf32>
    %c0_17 = arith.constant 0 : index
    %c0_18 = arith.constant 0 : index
    %25 = vector.load %arg8[%c0_17, %c0_18] : memref<8x1xf32, #tpu.memory_space<vmem>>, vector<8x1xf32>
    tpu.vector_store %arg8[%c0_17, %c0_18], %24 {strides = array<i32>} : memref<8x1xf32, #tpu.memory_space<vmem>>, vector<8x1xf32>,
    return
  }
  func.func @transform_0(%arg0: i32) -> (i32, i32) {
    %c0_i32 = arith.constant 0 : i32
    %c0_i32_0 = arith.constant 0 : i32
    return %arg0, %c0_i32 : i32, i32
  }
  func.func @transform_1(%arg0: i32) -> (i32, i32) {
    %c0_i32 = arith.constant 0 : i32
    %c0_i32_0 = arith.constant 0 : i32
    %c0_i32_1 = arith.constant 0 : i32
    return %c0_i32, %c0_i32_0 : i32, i32
  }
  func.func @transform_2(%arg0: i32) -> (i32, i32) {
    %c0_i32 = arith.constant 0 : i32
    %c0_i32_0 = arith.constant 0 : i32
    %c0_i32_1 = arith.constant 0 : i32
    return %c0_i32, %c0_i32_0 : i32, i32
  }
  func.func @transform_3(%arg0: i32) -> (i32, i32) {
    %c0_i32 = arith.constant 0 : i32
    %c0_i32_0 = arith.constant 0 : i32
    %c0_i32_1 = arith.constant 0 : i32
    return %c0_i32, %c0_i32_0 : i32, i32
  }
  func.func @transform_4(%arg0: i32) -> (i32, i32) {
    %c0_i32 = arith.constant 0 : i32
    %c0_i32_0 = arith.constant 0 : i32
    %c0_i32_1 = arith.constant 0 : i32
    return %c0_i32, %c0_i32_0 : i32, i32
  }
  func.func @transform_5(%arg0: i32) -> (i32, i32) {
    %c0_i32 = arith.constant 0 : i32
    %c0_i32_0 = arith.constant 0 : i32
    %c0_i32_1 = arith.constant 0 : i32
    return %c0_i32, %c0_i32_0 : i32, i32
  }
  func.func @transform_6(%arg0: i32) -> (i32, i32) {
    %c0_i32 = arith.constant 0 : i32
    %c0_i32_0 = arith.constant 0 : i32
    %c0_i32_1 = arith.constant 0 : i32
    return %c0_i32, %c0_i32_0 : i32, i32
  }
  func.func @transform_7(%arg0: i32) -> (i32, i32) {
    %c0_i32 = arith.constant 0 : i32
    %c0_i32_0 = arith.constant 0 : i32
    return %arg0, %c0_i32 : i32, i32
  }
}

</mosaic_0001>

<bundles_post_ra>
// kernel: tpu_custom_call.1
= control target key start
LH: loop header
LB: loop body
LE: loop exit
PB: predicated region body
PF: predicated region fallthrough
CT: control target
= control target key end

     0   :  { %vm51_vm0 = vcmask 261120   ;;  %vm106_vm1 = vcmask 523264   ;;  %vm137_vm2 = vcmask 7168   ;;  %s257_s1 = inlined_call_operand.vmem [shape: bf16[32,64], index: 1, kind: input, shape index: {}]   ;;  %s258_s0 = inlined_call_operand.vmem [shape: f32[8,32], index: 0, kind: input, shape index: {}]   ;;  %s259_s3 = inlined_call_operand.vmem [shape: bf16[64,32], index: 3, kind: input, shape index: {}]   ;;  %s260_s2 = inlined_call_operand.vmem [shape: f32[1,64], index: 2, kind: input, shape index: {}]   ;;  %s261_s4 = inlined_call_operand.vmem [shape: f32[1,32], index: 4, kind: input, shape index: {}]   ;;  %s262_s5 = inlined_call_operand.vmem [shape: f32[1,32], index: 5, kind: input, shape index: {}]   ;;  %s263_s6 = inlined_call_operand.<no memory space> [shape: f32[1,1], index: 6, kind: input, shape index: {}]   ;;  %s264_s7 = inlined_call_operand.vmem [shape: f32[8,1], index: 7, kind: output, shape index: {}]  }
   0x1   :  { %v170_v0 = vld [vmem:[%s257_s1 + $0x8] sm:$0xff]  ;;  %v174_v1 = vld [vmem:[%s259_s3 + $0x18] sm:$0xff]  ;;  %v169_v2 = vld [vmem:[%s257_s1] sm:$0xff]  ;;  %v12_v14 = vstv %s263_s6 }
   0x2   :  { %61 = vmatpush.bf16.msra.mxu0 %v170_v0  ;;  %v29_v3 = vld [vmem:[%s258_s0] sm:$0xff]  ;;  %114 = vmatpush.bf16.msra.mxu1 %v174_v1  ;;  %v173_v4 = vld [vmem:[%s259_s3 + $0x10] sm:$0xff]  ;;  %v172_v6 = vld [vmem:[%s259_s3 + $0x8] sm:$0xff]  ;;  %13 = vst [vmem:[#allocation2] sm:$0x1] %v12_v14 }
   0x3   :  { %v30_v5 = vpack.c.bf16 %v29_v3, %v29_v3  ;;  %v171_v7 = vld [vmem:[%s259_s3] sm:$0xff] }
   0x4   :  { %v175_v8 = vld [vmem:[%s260_s2] ss:$0 sm:$0xff] }
   0x5   :  { %v176_v15 = vld [vmem:[%s261_s4] ss:$0 sm:$0xff] }
   0x6   :  { %62 = vmatpush.bf16.msra.mxu0 %v169_v2  ;;  %115 = vmatpush.bf16.msra.mxu1 %v173_v4  ;;  %v177_v18 = vld [vmem:[%s262_s5] ss:$0 sm:$0xff] }
   0x9   :  { %151 = vmatmul.msk.bf16.vlgmr.msra.gmra.mxu0 %vm51_vm0, %v30_v5  ;;  %v178_v23 = vld [vmem:[#allocation2] ss:$0 sm:$0xff] }
   0xa   :  { %116 = vmatpush.bf16.msra.mxu1 %v172_v6 }
   0xe   :  { %117 = vmatpush.bf16.msra.mxu1 %v171_v7 }
  0x86   :  { %v64_v9 = vpop.f32.mrf.mxu0 }
  0x87   :  { %v65_v10 = vadd.f32 %v175_v8, %v64_v9 }
  0x89   :  { %v68_v11 = vmax.f32 %v65_v10, 0.0 }
  0x8b   :  { %v69_v12 = vpack.c.bf16 %v68_v11, %v68_v11 }
  0x8d   :  { %168 = vmatmul.msk.bf16.vlgmr.msra.gmra.mxu1 %vm106_vm1, %v69_v12 }
  0x8e   :  { %v66_v13 = vpop.f32.mrf.mxu0 }
 0x10a   :  { %v119_v16 = vpop.f32.mrf.mxu1 }
 0x10b   :  { %v120_v17 = vadd.f32 %v176_v15, %v119_v16 }
 0x10d   :  { %v123_v19 = vmax.f32 %v120_v17, 0.0 }
 0x10f   :  { %v128_v20 = vmul.f32 %v177_v18, %v123_v19 }
 0x111   :  { %v129_v21 = vsel %vm51_vm0, %v128_v20, 0.0 }
 0x112   :  { %v121_v22 = vpop.f32.mrf.mxu1  ;;  %130 = vadd.xlane.f32.xlu0 %v129_v21 }
 0x185   :  { %v131_v24 = vpop.xlane.xlu0 %130 }
 0x186   :  { %v136_v25 = vadd.f32 %v178_v23, %v131_v24 }
 0x188   :  { %138 = vst.msk [vmem:[%s264_s7] sm:$0xff] %vm137_vm2, %v136_v25 }

</bundles_post_ra>
